<compile_context>
chip_gen: v6e
topology: v6e:2x2x1
jax: 0.10.0
libtpu: 0.0.40
codegen_flags: <defaults>
</compile_context>

<pallas_src>
import math
import functools

import numpy as np
import jax
import jax.numpy as jnp
from jax import lax
from jax.experimental import pallas as pl
from jax.experimental.pallas import tpu as pltpu


# ----------------------------------------------------------------------------
# In-kernel math helpers
# ----------------------------------------------------------------------------
_SQRT_2 = math.sqrt(2.0)


def _erf(z):
    # Abramowitz & Stegun 7.1.26 (max abs error ~1.5e-7); only exp (EUP) + VPU ops.
    a1, a2, a3, a4, a5 = 0.254829592, -0.284496736, 1.421413741, -1.453152027, 1.061405429
    p = 0.3275911
    s = jnp.sign(z)
    za = jnp.abs(z)
    t = 1.0 / (1.0 + p * za)
    poly = ((((a5 * t + a4) * t + a3) * t + a2) * t + a1) * t
    return s * (1.0 - poly * jnp.exp(-za * za))


def _gelu_exact(x):
    return 0.5 * x * (1.0 + _erf(x / _SQRT_2))


# ----------------------------------------------------------------------------
# Pallas kernels
# ----------------------------------------------------------------------------
def s_proj_kernel(x_ref, w_ref, o_ref):
    # s = x @ s_w ; bf16 operands, f32 MXU accumulation, bf16 output.
    o_ref[...] = jnp.dot(x_ref[...].astype(jnp.bfloat16), w_ref[...],
                         preferred_element_type=jnp.float32).astype(o_ref.dtype)


def dwconv_kernel(x_ref, w_ref, o_ref, *, H, W, Cg, nh):
    # x_ref: (1, H+2p, W+2p, C) spatially padded input (p = nh), bf16.
    # w_ref: (Kmax, Kmax, C) merged per-head kernels (head j centered, f32).
    # o_ref: (1, H, W, C) bf16.
    # Row-resident accumulation: one (1, W, Cg) accumulator per head per output row,
    # stored exactly once; only head j's own Kj x Kj taps touch its channel slice.
    f32 = jnp.float32

    # Pre-extract per-head tap weights once (loop-invariant w.r.t. the row loop).
    wtaps = []
    for j in range(nh):
        Kj = 3 + 2 * j
        off = nh - 1 - j          # (Kmax - Kj) // 2
        c0 = j * Cg
        wtaps.append([
            [w_ref[pl.ds(off + kh, 1), pl.ds(off + kw, 1), pl.ds(c0, Cg)].astype(f32)
             for kw in range(Kj)]
            for kh in range(Kj)])

    def row_body(h, carry):
        for j in range(nh):
            Kj = 3 + 2 * j
            off = nh - 1 - j
            c0 = j * Cg
            acc = jnp.zeros((1, W, Cg), f32)
            for kh in range(Kj):
                for kw in range(Kj):
                    xs = x_ref[0, pl.ds(h + off + kh, 1), pl.ds(off + kw, W), pl.ds(c0, Cg)]
                    acc = acc + xs.astype(f32) * wtaps[j][kh][kw]
            # Per-head channel-slice store (masked when Cg < 128); the HBM writeback
            # of the (1,H,W,C) block is still lane-dense.
            o_ref[0, pl.ds(h, 1), :, pl.ds(c0, Cg)] = acc.astype(o_ref.dtype)
        return carry

    lax.fori_loop(0, H, row_body, 0)


def epilogue_kernel(x_ref, s_ref, vw_ref, w0_ref, b0_ref, scale_ref, shift_ref,
                    w1_ref, b1_ref, wp_ref, bp_ref, o_ref):
    bf = jnp.bfloat16
    # v = self.v(x), fused here (no HBM round trip for v).
    v = jnp.dot(x_ref[...].astype(bf), vw_ref[...], preferred_element_type=jnp.float32)
    # proj0 (block-diag dense, head-major-permuted rows) -> folded BN -> exact GELU.
    h = jnp.dot(s_ref[...], w0_ref[...], preferred_element_type=jnp.float32) + b0_ref[...]
    h = h * scale_ref[...] + shift_ref[...]
    h = _gelu_exact(h)
    # proj1 -> modulator
    mod = jnp.dot(h.astype(bf), w1_ref[...], preferred_element_type=jnp.float32) + b1_ref[...]
    # x = proj(modulator * v)
    xv = mod * v
    out = jnp.dot(xv.astype(bf), wp_ref[...], preferred_element_type=jnp.float32) + bp_ref[...]
    o_ref[...] = out.astype(o_ref.dtype)


# ----------------------------------------------------------------------------
# pallas_call wrappers
# ----------------------------------------------------------------------------
def _compiler_params(sem):
    return pltpu.CompilerParams(dimension_semantics=sem,
                                vmem_limit_bytes=32 * 1024 * 1024)


def _choose_tm(M, cap=512):
    # Biggest row tile up to `cap` (multiple of 8); small problems get one block
    # (partial final blocks are masked by Pallas, so no wrapper-side padding).
    if M >= cap:
        return cap
    return max(8, ((M + 7) // 8) * 8)


def pallas_s_proj(x2d, s_w_bf16):
    M, C = x2d.shape
    TM = _choose_tm(M, cap=1024)
    return pl.pallas_call(
        s_proj_kernel,
        out_shape=jax.ShapeDtypeStruct((M, C), jnp.bfloat16),
        grid=(pl.cdiv(M, TM),),
        in_specs=[pl.BlockSpec((TM, C), lambda i: (i, 0)),
                  pl.BlockSpec((C, C), lambda i: (0, 0))],
        out_specs=pl.BlockSpec((TM, C), lambda i: (i, 0)),
        compiler_params=_compiler_params(("parallel",)),
    )(x2d, s_w_bf16)


def pallas_dwconv_all(s_bhwc, w_full, nh):
    B, H, W, C = s_bhwc.shape
    Kmax = w_full.shape[0]
    assert Kmax == 2 * nh + 1
    p = (Kmax - 1) // 2
    Cg = C // nh
    xp = jnp.pad(s_bhwc, ((0, 0), (p, p), (p, p), (0, 0)))   # bf16 pad (half the bytes)
    Hp, Wp = H + 2 * p, W + 2 * p
    kern = functools.partial(dwconv_kernel, H=H, W=W, Cg=Cg, nh=nh)
    return pl.pallas_call(
        kern,
        out_shape=jax.ShapeDtypeStruct((B, H, W, C), s_bhwc.dtype),
        grid=(B,),
        in_specs=[pl.BlockSpec((1, Hp, Wp, C), lambda b: (b, 0, 0, 0)),
                  pl.BlockSpec((Kmax, Kmax, C), lambda b: (0, 0, 0))],
        out_specs=pl.BlockSpec((1, H, W, C), lambda b: (b, 0, 0, 0)),
        compiler_params=_compiler_params(("parallel",)),
    )(xp, w_full)


def pallas_epilogue(x2d, s2d, vw, w0, b0, scale, shift, w1, b1, wp, bp):
    M, C = x2d.shape
    E = w0.shape[1]
    TM = _choose_tm(M, cap=512)
    return pl.pallas_call(
        epilogue_kernel,
        out_shape=jax.ShapeDtypeStruct((M, C), jnp.float32),
        grid=(pl.cdiv(M, TM),),
        in_specs=[pl.BlockSpec((TM, C), lambda i: (i, 0)),     # x (f32)
                  pl.BlockSpec((TM, C), lambda i: (i, 0)),     # s_conv (bf16)
                  pl.BlockSpec((C, C), lambda i: (0, 0)),      # v weight (bf16)
                  pl.BlockSpec((C, E), lambda i: (0, 0)),      # proj0 weight (bf16)
                  pl.BlockSpec((1, E), lambda i: (0, 0)),      # proj0 bias
                  pl.BlockSpec((1, E), lambda i: (0, 0)),      # bn scale
                  pl.BlockSpec((1, E), lambda i: (0, 0)),      # bn shift
                  pl.BlockSpec((E, C), lambda i: (0, 0)),      # proj1 weight (bf16)
                  pl.BlockSpec((1, C), lambda i: (0, 0)),      # proj1 bias
                  pl.BlockSpec((C, C), lambda i: (0, 0)),      # proj weight (bf16)
                  pl.BlockSpec((1, C), lambda i: (0, 0))],     # proj bias
        out_specs=pl.BlockSpec((TM, C), lambda i: (i, 0)),
        compiler_params=_compiler_params(("parallel",)),
    )(x2d, s2d, vw, w0, b0.reshape(1, E), scale.reshape(1, E), shift.reshape(1, E),
      w1, b1.reshape(1, C), wp, bp.reshape(1, C))


# ----------------------------------------------------------------------------
# Parameters (deterministic in-script init, matching the module's shapes)
# ----------------------------------------------------------------------------
def init_params(key, dim, ca_num_heads=4, expand_ratio=2, dtype=jnp.float32):
    nh = ca_num_heads
    Cg = dim // nh            # channels per head == split_groups
    G = Cg                    # groups of proj0
    keys = jax.random.split(key, 16)

    def trunc_normal(k, shape, std=0.02):
        return (std * jax.random.truncated_normal(k, -2.0, 2.0, shape)).astype(dtype)

    params = {}
    # nn.Linear weights stored as (in, out); qkv_bias=False -> v, s have no bias.
    params["v_w"] = trunc_normal(keys[0], (dim, dim))
    params["s_w"] = trunc_normal(keys[1], (dim, dim))

    params["proj_w"] = trunc_normal(keys[2], (dim, dim))
    params["proj_b"] = jnp.zeros((dim,), dtype)

    # depthwise convs local_conv_{i+1}: kernel 3+2i, groups=Cg -> weight (K, K, Cg).
    # Merged weight: head i's kernel centered inside a Kmax x Kmax window in channels
    # [i*Cg, (i+1)*Cg); only that window is ever read by the conv kernel.
    Kmax = 3 + 2 * (nh - 1)
    dw = []
    dw_full = jnp.zeros((Kmax, Kmax, dim), dtype)
    for i in range(nh):
        K = 3 + 2 * i
        std = math.sqrt(2.0 / (K * K))  # fan_out // groups = K*K*Cg / Cg
        w_i = (std * jax.random.normal(keys[3 + i], (K, K, Cg))).astype(dtype)
        dw.append(w_i)
        off = (Kmax - K) // 2
        dw_full = dw_full.at[off:off + K, off:off + K, i * Cg:(i + 1) * Cg].set(w_i)
    params["dw_ws"] = dw
    params["dw_full"] = dw_full

    # proj0: grouped 1x1 conv dim -> dim*expand, groups=G, block-diag dense.
    # PyTorch feeds proj0 the interleaved channel order c' = g*nh + i; the kernel path
    # keeps the conv output in head-major order c = i*Cg + g and absorbs the channel
    # permutation into the weight rows.
    in_pg = dim // G          # = nh
    out_pg = dim * expand_ratio // G
    std0 = math.sqrt(2.0 / out_pg)
    blocks = (std0 * jax.random.normal(keys[8], (G, in_pg, out_pg))).astype(dtype)
    w0_cp = jnp.zeros((dim, dim * expand_ratio), dtype)
    for g in range(G):
        w0_cp = w0_cp.at[g * in_pg:(g + 1) * in_pg, g * out_pg:(g + 1) * out_pg].set(blocks[g])
    params["proj0_w_cp"] = w0_cp                                   # PyTorch (c') order
    perm = np.array([(c % Cg) * nh + (c // Cg) for c in range(dim)], dtype=np.int32)
    params["proj0_w_hm"] = w0_cp[perm, :]                          # head-major order
    params["proj0_b"] = jnp.zeros((dim * expand_ratio,), dtype)

    # BatchNorm2d (inference): gamma=1, beta=0, mean=0, var=1, eps=1e-5 -> scale/shift.
    eps = 1e-5
    gamma = jnp.ones((dim * expand_ratio,), dtype)
    beta = jnp.zeros((dim * expand_ratio,), dtype)
    mean = jnp.zeros((dim * expand_ratio,), dtype)
    var = jnp.ones((dim * expand_ratio,), dtype)
    scale = gamma / jnp.sqrt(var + eps)
    params["bn_scale"] = scale
    params["bn_shift"] = beta - mean * scale

    # proj1: 1x1 conv dim*expand -> dim
    std1 = math.sqrt(2.0 / dim)
    params["proj1_w"] = (std1 * jax.random.normal(keys[9], (dim * expand_ratio, dim))).astype(dtype)
    params["proj1_b"] = jnp.zeros((dim,), dtype)
    return params


# ----------------------------------------------------------------------------
# Forward pass (ca_attention == 1 branch)
# ----------------------------------------------------------------------------
def attention_forward(params, x, H, W, ca_num_heads=4):
    B, N, C = x.shape
    assert N == H * W
    bf = jnp.bfloat16
    x2d = x.reshape(B * N, C)

    # s = self.s(x) -- bf16 matmul, bf16 activation for the conv stage.
    s2d = pallas_s_proj(x2d, params["s_w"].astype(bf))

    # All per-head depthwise convs in one kernel; output stays head-major, bf16.
    s_bhwc = s2d.reshape(B, H, W, C)
    s_conv = pallas_dwconv_all(s_bhwc, params["dw_full"], nh=ca_num_heads)
    s_conv2d = s_conv.reshape(B * H * W, C)

    # v + proj0 -> BN -> GELU -> proj1 -> (modulator * v) -> proj, fused (proj_drop p=0).
    out2d = pallas_epilogue(
        x2d, s_conv2d,
        params["v_w"].astype(bf),
        params["proj0_w_hm"].astype(bf), params["proj0_b"],
        params["bn_scale"], params["bn_shift"],
        params["proj1_w"].astype(bf), params["proj1_b"],
        params["proj_w"].astype(bf), params["proj_b"])
    return out2d.reshape(B, N, C)


# ----------------------------------------------------------------------------
# Pure-JAX f32 reference mirroring PyTorch's channel interleave (c' = g*nh + i) and
# using the un-permuted proj0 weight -- validates the kernel path's permutation.
# ----------------------------------------------------------------------------
def attention_reference(params, x, H, W, ca_num_heads=4):
    B, N, C = x.shape
    Cg = C // ca_num_heads
    x2d = x.reshape(B * N, C)
    v2d = x2d @ params["v_w"]
    s2d = x2d @ params["s_w"]
    s_bhwc = s2d.reshape(B, H, W, C)
    outs = []
    for i in range(ca_num_heads):
        K = 3 + 2 * i
        p = (K - 1) // 2
        w = params["dw_ws"][i][:, :, None, :]             # (K, K, 1, Cg) HWIO
        o = jax.lax.conv_general_dilated(
            s_bhwc[..., i * Cg:(i + 1) * Cg], w, (1, 1), [(p, p), (p, p)],
            dimension_numbers=("NHWC", "HWIO", "NHWC"), feature_group_count=Cg)
        outs.append(o)
    # PyTorch cat/reshape channel ordering: c' = g*ca_num_heads + i
    s_out2d = jnp.stack(outs, axis=-1).reshape(B, H, W, C).reshape(B * H * W, C)
    h = (s_out2d @ params["proj0_w_cp"] + params["proj0_b"]) * params["bn_scale"] + params["bn_shift"]
    h = jax.nn.gelu(h, approximate=False)
    mod = h @ params["proj1_w"] + params["proj1_b"]
    out = (mod * v2d) @ params["proj_w"] + params["proj_b"]
    return out.reshape(B, N, C)


# ----------------------------------------------------------------------------
if __name__ == "__main__":
    B, H, W, dim = 2, 8, 8, 32
    N = H * W
    key = jax.random.PRNGKey(0)
    k_param, k_x = jax.random.split(key)
    params = init_params(k_param, dim, ca_num_heads=4, expand_ratio=2)
    x = jax.random.normal(k_x, (B, N, dim), dtype=jnp.float32)

    out = jax.block_until_ready(attention_forward(params, x, H, W, ca_num_heads=4))
    ref = jax.block_until_ready(attention_reference(params, x, H, W, ca_num_heads=4))

    assert out.shape == (B, N, dim)
    ref_scale = float(jnp.max(jnp.abs(ref)))
    max_err = float(jnp.max(jnp.abs(out.astype(jnp.float32) - ref)))
    # bf16 matmul operands (f32 accumulation) vs f32 reference: allow ~5% of the
    # output scale; structural bugs would produce errors of order ref_scale itself.
    assert ref_scale > 0.0
    assert max_err <= 5e-2 * ref_scale, f"max abs error too large: {max_err} vs scale {ref_scale}"
    print("KERNEL_OK")
</pallas_src>

<mosaic_0001>
module attributes {stable_mosaic.version = 11 : i64} {
  func.func @s_proj_kernel(%arg0: i32, %arg1: memref<128x32xf32, #tpu.memory_space<vmem>>, %arg2: memref<32x32xbf16, #tpu.memory_space<vmem>>, %arg3: memref<128x32xbf16, #tpu.memory_space<vmem>>) attributes {dimension_semantics = [#tpu.dimension_semantics<parallel>], iteration_bounds = array<i64: 1>, scalar_prefetch = 0 : i64, scratch_operands = 0 : i64, tpu.core_type = #tpu.core_type<tc>, window_params = [{transform_indices = @transform_0, window_bounds = array<i64: 128, 32>}, {pipeline_mode = #tpu.pipeline_mode<synchronous>, transform_indices = @transform_1, window_bounds = array<i64: 32, 32>}, {transform_indices = @transform_2, window_bounds = array<i64: 128, 32>}]} {
    %c0 = arith.constant 0 : index
    %c0_0 = arith.constant 0 : index
    %0 = vector.load %arg1[%c0, %c0_0] : memref<128x32xf32, #tpu.memory_space<vmem>>, vector<128x32xf32>
    %1 = arith.truncf %0 : vector<128x32xf32> to vector<128x32xbf16>
    %c0_1 = arith.constant 0 : index
    %c0_2 = arith.constant 0 : index
    %2 = vector.load %arg2[%c0_1, %c0_2] : memref<32x32xbf16, #tpu.memory_space<vmem>>, vector<32x32xbf16>
    %cst = arith.constant dense<0.000000e+00> : vector<128x32xf32>
    %3 = tpu.matmul %1, %2, %cst {dimension_numbers = #tpu.dot_dimension_numbers<[1], [0], [0], [1], [0, 0, 1, 1], [], []>} : vector<128x32xbf16>, vector<32x32xbf16>, vector<128x32xf32> -> vector<128x32xf32>
    %4 = arith.truncf %3 : vector<128x32xf32> to vector<128x32xbf16>
    %c0_3 = arith.constant 0 : index
    %c0_4 = arith.constant 0 : index
    %5 = vector.load %arg3[%c0_3, %c0_4] : memref<128x32xbf16, #tpu.memory_space<vmem>>, vector<128x32xbf16>
    tpu.vector_store %arg3[%c0_3, %c0_4], %4 {strides = array<i32>} : memref<128x32xbf16, #tpu.memory_space<vmem>>, vector<128x32xbf16>,
    return
  }
  func.func @transform_0(%arg0: i32) -> (i32, i32) {
    %c0_i32 = arith.constant 0 : i32
    %c0_i32_0 = arith.constant 0 : i32
    return %arg0, %c0_i32 : i32, i32
  }
  func.func @transform_1(%arg0: i32) -> (i32, i32) {
    %c0_i32 = arith.constant 0 : i32
    %c0_i32_0 = arith.constant 0 : i32
    %c0_i32_1 = arith.constant 0 : i32
    return %c0_i32, %c0_i32_0 : i32, i32
  }
  func.func @transform_2(%arg0: i32) -> (i32, i32) {
    %c0_i32 = arith.constant 0 : i32
    %c0_i32_0 = arith.constant 0 : i32
    return %arg0, %c0_i32 : i32, i32
  }
}

</mosaic_0001>

<bundles_post_ra>
// kernel: tpu_custom_call.1
= control target key start
LH: loop header
LB: loop body
LE: loop exit
PB: predicated region body
PF: predicated region fallthrough
CT: control target
= control target key end

     0   :  { %vm52_vm0 = vcmask 261120   ;;  %vm238_vm1 = vcmask 257024   ;;  %s478_s1 = inlined_call_operand.vmem [shape: bf16[32,32], index: 1, kind: input, shape index: {}]   ;;  %s479_s0 = inlined_call_operand.vmem [shape: f32[128,32], index: 0, kind: input, shape index: {}]   ;;  %s480_s2 = inlined_call_operand.vmem [shape: bf16[128,32], index: 2, kind: output, shape index: {}]  }
   0x1   :  { %v335_v0 = vld [vmem:[%s478_s1 + $0x8] sm:$0xff]   ;;  %v336_v1 = vld [vmem:[%s478_s1] sm:$0xff]   ;;  %v14_v7 = vld [vmem:[%s479_s0 + $0x10] sm:$0xff] }
   0x2   :  { %311 = vmatprep.subr.bf16.mxu0 %v335_v0  ;;  %331 = vmatprep.subr.bf16.mxu1 %v335_v0  ;;  %v12_v2 = vld [vmem:[%s479_s0] sm:$0xff]  ;;  %v13_v3 = vld [vmem:[%s479_s0 + $0x8] sm:$0xff]  ;;  %v15_v8 = vld [vmem:[%s479_s0 + $0x18] sm:$0xff] }
   0x3   :  { %v20_v4 = vld [vmem:[%s479_s0 + $0x40] sm:$0xff]  ;;  %312 = vmatpush3.bf16.msra.mxu0 %v335_v0  ;;  %333 = vmatpush3.bf16.msra.mxu1 %v335_v0  ;;  %v28_v5 = vpack.c.bf16 %v13_v3, %v12_v2  ;;  %v21_v6 = vld [vmem:[%s479_s0 + $0x48] sm:$0xff]  ;;  %v22_v10 = vld [vmem:[%s479_s0 + $0x50] sm:$0xff]  ;;  %v29_v16 = vpack.c.bf16 %v15_v8, %v14_v7 }
   0x4   :  { %313 = vmatprep.subr.bf16.mxu0 %v336_v1  ;;  %332 = vmatprep.subr.bf16.mxu1 %v336_v1  ;;  %v32_v9 = vpack.c.bf16 %v21_v6, %v20_v4  ;;  %v23_v11 = vld [vmem:[%s479_s0 + $0x58] sm:$0xff]  ;;  %v16_v12 = vld [vmem:[%s479_s0 + $0x20] sm:$0xff]  ;;  %v17_v13 = vld [vmem:[%s479_s0 + $0x28] sm:$0xff] }
   0x5   :  { %315 = vmatprep.mubr.msk.bf16.mxu0 %vm52_vm0, %v28_v5  ;;  %v24_v14 = vld [vmem:[%s479_s0 + $0x60] sm:$0xff]  ;;  %v25_v15 = vld [vmem:[%s479_s0 + $0x68] sm:$0xff]  ;;  %v33_v17 = vpack.c.bf16 %v23_v11, %v22_v10  ;;  %v30_v18 = vpack.c.bf16 %v17_v13, %v16_v12  ;;  %v18_v20 = vld [vmem:[%s479_s0 + $0x30] sm:$0xff] }
   0x6   :  { %323 = vmatprep.mubr.msk.bf16.mxu1 %vm52_vm0, %v32_v9  ;;  %v34_v19 = vpack.c.bf16 %v25_v15, %v24_v14  ;;  %v19_v21 = vld [vmem:[%s479_s0 + $0x38] sm:$0xff]  ;;  %v26_v22 = vld [vmem:[%s479_s0 + $0x70] sm:$0xff] }
   0x7   :  { %314 = vmatpush3.bf16.msra.mxu0 %v336_v1  ;;  %334 = vmatpush3.bf16.msra.mxu1 %v336_v1  ;;  %v27_v23 = vld [vmem:[%s479_s0 + $0x78] sm:$0xff]  ;;  %v31_v24 = vpack.c.bf16 %v19_v21, %v18_v20 }
   0x8   :  { %v35_v25 = vpack.c.bf16 %v27_v23, %v26_v22 }
   0xa   :  { %316 = vmatmul.mubr.msk.bf16.vlgmr.msra.gmra.mxu0 %vm52_vm0, %v29_v16  ;;  %324 = vmatmul.mubr.msk.bf16.vlgmr.msra.gmra.mxu1 %vm52_vm0, %v33_v17 }
   0xb   :  { %319 = vmatprep.mubr.msk.bf16.mxu0 %vm52_vm0, %v30_v18  ;;  %327 = vmatprep.mubr.msk.bf16.mxu1 %vm52_vm0, %v34_v19 }
  0x12   :  { %320 = vmatmul.mubr.msk.bf16.gmra.mxu0 %vm52_vm0, %v31_v24  ;;  %328 = vmatmul.mubr.msk.bf16.gmra.mxu1 %vm52_vm0, %v35_v25 }
  0xca   :  { %v317_v26 = vpop.f32.mrf.mxu0  ;;  %v325_v27 = vpop.f32.mrf.mxu1 }
  0xcb   :  { %v287_v28 = vpack.c.bf16 %v317_v26, %v317_v26  ;;  %v295_v29 = vpack.c.bf16 %v325_v27, %v325_v27 }
  0xcc   :  { %v111_v30 = vpop.f32.mrf.mxu0  ;;  %v143_v31 = vpop.f32.mrf.mxu1 }
  0xcd   :  { %241 = vst.msk [vmem:[%s480_s2 + $0x8] sm:$0xf] %vm238_vm1, %v287_v28  ;;  %249 = vst.msk [vmem:[%s480_s2 + $0x28] sm:$0xf] %vm238_vm1, %v295_v29  ;;  %v285_v32 = vpack.c.bf16 %v111_v30, %v111_v30  ;;  %v293_v33 = vpack.c.bf16 %v143_v31, %v143_v31 }
  0xce   :  { %v318_v34 = vpop.f32.mrf.mxu0  ;;  %v326_v35 = vpop.f32.mrf.mxu1 }
  0xcf   :  { %239 = vst.msk [vmem:[%s480_s2] sm:$0xf] %vm238_vm1, %v285_v32  ;;  %247 = vst.msk [vmem:[%s480_s2 + $0x20] sm:$0xf] %vm238_vm1, %v293_v33  ;;  %v288_v36 = vpack.c.bf16 %v318_v34, %v318_v34  ;;  %v296_v37 = vpack.c.bf16 %v326_v35, %v326_v35 }
  0xd0   :  { %v114_v38 = vpop.f32.mrf.mxu0  ;;  %v146_v39 = vpop.f32.mrf.mxu1 }
  0xd1   :  { %242 = vst.msk [vmem:[%s480_s2 + $0xc] sm:$0xf] %vm238_vm1, %v288_v36  ;;  %250 = vst.msk [vmem:[%s480_s2 + $0x2c] sm:$0xf] %vm238_vm1, %v296_v37  ;;  %v286_v40 = vpack.c.bf16 %v114_v38, %v114_v38  ;;  %v294_v41 = vpack.c.bf16 %v146_v39, %v146_v39 }
  0xd2   :  { %v321_v42 = vpop.f32.mrf.mxu0  ;;  %v329_v43 = vpop.f32.mrf.mxu1 }
  0xd3   :  { %240 = vst.msk [vmem:[%s480_s2 + $0x4] sm:$0xf] %vm238_vm1, %v286_v40  ;;  %248 = vst.msk [vmem:[%s480_s2 + $0x24] sm:$0xf] %vm238_vm1, %v294_v41  ;;  %v291_v44 = vpack.c.bf16 %v321_v42, %v321_v42  ;;  %v299_v45 = vpack.c.bf16 %v329_v43, %v329_v43 }
  0xd4   :  { %v127_v46 = vpop.f32.mrf.mxu0  ;;  %v159_v47 = vpop.f32.mrf.mxu1 }
  0xd5   :  { %245 = vst.msk [vmem:[%s480_s2 + $0x18] sm:$0xf] %vm238_vm1, %v291_v44  ;;  %253 = vst.msk [vmem:[%s480_s2 + $0x38] sm:$0xf] %vm238_vm1, %v299_v45  ;;  %v289_v48 = vpack.c.bf16 %v127_v46, %v127_v46  ;;  %v297_v49 = vpack.c.bf16 %v159_v47, %v159_v47 }
  0xd6   :  { %v322_v50 = vpop.f32.mrf.mxu0  ;;  %v330_v51 = vpop.f32.mrf.mxu1 }
  0xd7   :  { %243 = vst.msk [vmem:[%s480_s2 + $0x10] sm:$0xf] %vm238_vm1, %v289_v48  ;;  %251 = vst.msk [vmem:[%s480_s2 + $0x30] sm:$0xf] %vm238_vm1, %v297_v49  ;;  %v292_v52 = vpack.c.bf16 %v322_v50, %v322_v50  ;;  %v300_v53 = vpack.c.bf16 %v330_v51, %v330_v51 }
  0xd8   :  { %v130_v54 = vpop.f32.mrf.mxu0  ;;  %v162_v55 = vpop.f32.mrf.mxu1 }
  0xd9   :  { %246 = vst.msk [vmem:[%s480_s2 + $0x1c] sm:$0xf] %vm238_vm1, %v292_v52  ;;  %254 = vst.msk [vmem:[%s480_s2 + $0x3c] sm:$0xf] %vm238_vm1, %v300_v53  ;;  %v290_v56 = vpack.c.bf16 %v130_v54, %v130_v54  ;;  %v298_v57 = vpack.c.bf16 %v162_v55, %v162_v55 }
  0xdb   :  { %244 = vst.msk [vmem:[%s480_s2 + $0x14] sm:$0xf] %vm238_vm1, %v290_v56  ;;  %252 = vst.msk [vmem:[%s480_s2 + $0x34] sm:$0xf] %vm238_vm1, %v298_v57 }

</bundles_post_ra>
